<compile_context>
chip_gen: v7x
topology: tpu7x:2x2x1
jax: 0.10.0
libtpu: 0.0.40
codegen_flags: <defaults>
</compile_context>

<pallas_src>
import functools

import jax
import jax.numpy as jnp
import numpy as np
from jax import lax
from jax.experimental import pallas as pl
from jax.experimental.pallas import tpu as pltpu


def _choose_q_tile(seq_len: int) -> int:
    """Largest query tile <= 256 dividing seq_len (multiple of 8), else full seq."""
    if seq_len <= 256:
        return seq_len
    for tq in (256, 128, 64, 32, 16, 8):
        if seq_len % tq == 0:
            return tq
    return seq_len


# ----------------------------------------------------------------------------
# Kernel: one (batch, head, q-tile) step = K/Q projection + scaled-dot-product
# attention for that head's query tile against the full sequence.
# ----------------------------------------------------------------------------
def _mha_kernel(x_ref, wk_ref, wq_ref, bk_ref, bq_ref, v_ref, o_ref, a_ref, *,
                tq, inv_temp):
    # x_ref : (1, T, d_in)      f32   activations, resident across (head, q-tile)
    # wk_ref: (1, d_in, d_k)    bf16  this head's Wk^T
    # wq_ref: (1, d_in, d_k)    bf16  this head's Wq^T
    # bk_ref: (1, 1, d_k)       f32   this head's bk
    # bq_ref: (1, 1, d_k)       f32   this head's bq
    # v_ref : (1, 1, T, d_head) bf16  this head's V slice of the input
    # o_ref : (1, 1, TQ, d_head) f32  attention output tile
    # a_ref : (1, 1, TQ, T)           attention probabilities tile (lane-dense)
    qi = pl.program_id(2)

    x_bf = x_ref[0].astype(jnp.bfloat16)                               # (T, d_in)

    # K for the full sequence (bf16 MXU operands, f32 accumulate).
    k = jnp.dot(x_bf, wk_ref[0], preferred_element_type=jnp.float32) + bk_ref[0]   # (T, d_k)

    # Q only for this query tile (sublane-aligned dynamic slice of the resident x).
    row0 = pl.multiple_of(qi * tq, tq)
    xq_bf = x_ref[0, pl.ds(row0, tq), :].astype(jnp.bfloat16)          # (TQ, d_in)
    q = jnp.dot(xq_bf, wq_ref[0], preferred_element_type=jnp.float32) + bq_ref[0]  # (TQ, d_k)
    q = q * inv_temp          # fold 1/temperature into the small (TQ, d_k) tile

    # scores = (q / temperature) @ k^T : bf16 operands, f32 accumulate.
    s = lax.dot_general(q.astype(jnp.bfloat16), k.astype(jnp.bfloat16),
                        (((1,), (1,)), ((), ())),
                        preferred_element_type=jnp.float32)            # (TQ, T)

    # Numerically stable softmax, f32 math; approx reciprocal on the EUP slot.
    s = s - jnp.max(s, axis=-1, keepdims=True)
    e = jnp.exp(s)
    p = e * pl.reciprocal(jnp.sum(e, axis=-1, keepdims=True), approx=True)
    a_ref[0, 0] = p.astype(a_ref.dtype)
    # TODO(synk): attn_dropout omitted (eval-mode identity); pad_mask path unused (None).

    o = jnp.dot(p.astype(jnp.bfloat16), v_ref[0, 0],
                preferred_element_type=jnp.float32)                    # (TQ, d_head)
    o_ref[0, 0] = o.astype(o_ref.dtype)


# ----------------------------------------------------------------------------
# Module wrapper
# ----------------------------------------------------------------------------
@functools.partial(jax.jit, static_argnames=("n_head", "d_k", "d_in", "attn_dtype"))
def multi_head_attention(v, params, n_head, d_k, d_in, attn_dtype=jnp.float32):
    sz_b, seq_len, _ = v.shape
    d_head = d_in // n_head
    inv_temp = float(1.0 / np.sqrt(d_k))
    tq = _choose_q_tile(seq_len)
    nq = seq_len // tq

    # Head-leading parameter layouts so per-head operands are selected by BlockSpec
    # index_maps (no sub-128-lane slicing inside the kernel).
    wk = params["wk"].reshape(n_head, d_k, d_in).transpose(0, 2, 1).astype(jnp.bfloat16)
    wq = params["wq"].reshape(n_head, d_k, d_in).transpose(0, 2, 1).astype(jnp.bfloat16)
    bk = params["bk"].reshape(n_head, 1, d_k).astype(jnp.float32)
    bq = params["bq"].reshape(n_head, 1, d_k).astype(jnp.float32)
    # Per-head V = contiguous d_head channel slices of the input, head-leading, bf16
    # (cast fuses with the transpose; bf16 halves the per-step V DMA).
    v_heads = v.reshape(sz_b, seq_len, n_head, d_head).transpose(2, 0, 1, 3)
    v_heads = v_heads.astype(jnp.bfloat16)

    kernel = functools.partial(_mha_kernel, tq=tq, inv_temp=inv_temp)

    out, attn = pl.pallas_call(
        kernel,
        out_shape=(
            jax.ShapeDtypeStruct((n_head, sz_b, seq_len, d_head), jnp.float32),
            jax.ShapeDtypeStruct((n_head, sz_b, seq_len, seq_len), attn_dtype),
        ),
        grid=(sz_b, n_head, nq),
        in_specs=[
            pl.BlockSpec((1, seq_len, d_in), lambda b, h, q: (b, 0, 0)),        # x (resident per b)
            pl.BlockSpec((1, d_in, d_k), lambda b, h, q: (h, 0, 0)),            # Wk^T_h
            pl.BlockSpec((1, d_in, d_k), lambda b, h, q: (h, 0, 0)),            # Wq^T_h
            pl.BlockSpec((1, 1, d_k), lambda b, h, q: (h, 0, 0)),               # bk_h
            pl.BlockSpec((1, 1, d_k), lambda b, h, q: (h, 0, 0)),               # bq_h
            pl.BlockSpec((1, 1, seq_len, d_head), lambda b, h, q: (h, b, 0, 0)),  # V_h
        ],
        out_specs=(
            pl.BlockSpec((1, 1, tq, d_head), lambda b, h, q: (h, b, q, 0)),
            pl.BlockSpec((1, 1, tq, seq_len), lambda b, h, q: (h, b, q, 0)),
        ),
        compiler_params=pltpu.CompilerParams(
            dimension_semantics=("parallel", "parallel", "parallel"),
            vmem_limit_bytes=64 * 1024 * 1024,
        ),
    )(v, wk, wq, bk, bq, v_heads)
    return out, attn


# ----------------------------------------------------------------------------
# pure-JAX reference mirroring the kernel's numerics (bf16 MXU operands, f32
# accumulation / softmax) for a tight correctness check
# ----------------------------------------------------------------------------
def _reference(v, params, n_head, d_k, d_in):
    sz_b, seq_len, _ = v.shape
    d_head = d_in // n_head
    inv_temp = 1.0 / float(np.sqrt(d_k))
    bf = lambda a: a.astype(jnp.bfloat16)

    x2 = v.reshape(-1, d_in)
    k = jnp.dot(bf(x2), bf(params["wk"].T),
                preferred_element_type=jnp.float32) + params["bk"]
    q = jnp.dot(bf(x2), bf(params["wq"].T),
                preferred_element_type=jnp.float32) + params["bq"]
    k = jnp.transpose(k.reshape(sz_b, seq_len, n_head, d_k), (2, 0, 1, 3)).reshape(-1, seq_len, d_k)
    q = jnp.transpose(q.reshape(sz_b, seq_len, n_head, d_k), (2, 0, 1, 3)).reshape(-1, seq_len, d_k)
    vh = jnp.transpose(v.reshape(sz_b, seq_len, n_head, d_head), (2, 0, 1, 3)).reshape(-1, seq_len, d_head)
    s = jnp.einsum("btd,bsd->bts", bf(q * inv_temp), bf(k),
                   preferred_element_type=jnp.float32)
    p = jax.nn.softmax(s, axis=-1)
    o = jnp.einsum("bts,bsd->btd", bf(p), bf(vh),
                   preferred_element_type=jnp.float32)
    return (o.reshape(n_head, sz_b, seq_len, d_head),
            p.reshape(n_head, sz_b, seq_len, seq_len))


if __name__ == "__main__":
    # module config
    n_head, d_k, d_in = 4, 8, 32
    sz_b, seq_len = 2, 8

    key = jax.random.PRNGKey(0)
    kv, kwk, kwq, kbk, kbq = jax.random.split(key, 5)

    v = jax.random.normal(kv, (sz_b, seq_len, d_in), dtype=jnp.float32)

    std = float(np.sqrt(2.0 / d_k))
    bound = 1.0 / float(np.sqrt(d_in))
    params = {
        "wk": std * jax.random.normal(kwk, (n_head * d_k, d_in), dtype=jnp.float32),
        "wq": std * jax.random.normal(kwq, (n_head * d_k, d_in), dtype=jnp.float32),
        "bk": jax.random.uniform(kbk, (n_head * d_k,), jnp.float32, -bound, bound),
        "bq": jax.random.uniform(kbq, (n_head * d_k,), jnp.float32, -bound, bound),
    }

    out, attn = multi_head_attention(v, params, n_head, d_k, d_in)
    out, attn = jax.block_until_ready((out, attn))

    ref_out, ref_attn = _reference(v, params, n_head, d_k, d_in)
    # bf16 MXU operands + approx reciprocal introduce small drift vs exact divide;
    # the reference mirrors the bf16/f32 mixed precision, so 2e-2 is generous.
    assert np.allclose(np.asarray(out), np.asarray(ref_out), atol=2e-2, rtol=2e-2)
    assert np.allclose(np.asarray(attn), np.asarray(ref_attn), atol=2e-2, rtol=2e-2)

    print("KERNEL_OK")
</pallas_src>

<mosaic_0001>
module attributes {stable_mosaic.version = 11 : i64} {
  func.func @_mha_kernel(%arg0: i32, %arg1: i32, %arg2: i32, %arg3: memref<1x8x32xf32, #tpu.memory_space<vmem>>, %arg4: memref<1x32x8xbf16, #tpu.memory_space<vmem>>, %arg5: memref<1x32x8xbf16, #tpu.memory_space<vmem>>, %arg6: memref<1x1x8xf32, #tpu.memory_space<vmem>>, %arg7: memref<1x1x8xf32, #tpu.memory_space<vmem>>, %arg8: memref<1x1x8x8xbf16, #tpu.memory_space<vmem>>, %arg9: memref<1x1x8x8xf32, #tpu.memory_space<vmem>>, %arg10: memref<1x1x8x8xf32, #tpu.memory_space<vmem>>) attributes {dimension_semantics = [#tpu.dimension_semantics<parallel>, #tpu.dimension_semantics<parallel>, #tpu.dimension_semantics<parallel>], iteration_bounds = array<i64: 2, 4, 1>, scalar_prefetch = 0 : i64, scratch_operands = 0 : i64, tpu.core_type = #tpu.core_type<tc>, window_params = [{transform_indices = @transform_0, window_bounds = array<i64: 1, 8, 32>}, {transform_indices = @transform_1, window_bounds = array<i64: 1, 32, 8>}, {transform_indices = @transform_2, window_bounds = array<i64: 1, 32, 8>}, {transform_indices = @transform_3, window_bounds = array<i64: 1, 1, 8>}, {transform_indices = @transform_4, window_bounds = array<i64: 1, 1, 8>}, {transform_indices = @transform_5, window_bounds = array<i64: 1, 1, 8, 8>}, {transform_indices = @transform_6, window_bounds = array<i64: 1, 1, 8, 8>}, {transform_indices = @transform_7, window_bounds = array<i64: 1, 1, 8, 8>}]} {
    %c0 = arith.constant 0 : index
    %c0_0 = arith.constant 0 : index
    %c0_1 = arith.constant 0 : index
    %0 = vector.load %arg3[%c0, %c0_0, %c0_1] : memref<1x8x32xf32, #tpu.memory_space<vmem>>, vector<1x8x32xf32>
    %1 = vector.shape_cast %0 : vector<1x8x32xf32> to vector<8x32xf32>
    %2 = arith.truncf %1 : vector<8x32xf32> to vector<8x32xbf16>
    %c0_2 = arith.constant 0 : index
    %c0_3 = arith.constant 0 : index
    %c0_4 = arith.constant 0 : index
    %3 = vector.load %arg4[%c0_2, %c0_3, %c0_4] : memref<1x32x8xbf16, #tpu.memory_space<vmem>>, vector<1x32x8xbf16>
    %4 = vector.shape_cast %3 : vector<1x32x8xbf16> to vector<32x8xbf16>
    %cst = arith.constant dense<0.000000e+00> : vector<8x8xf32>
    %5 = tpu.matmul %2, %4, %cst {dimension_numbers = #tpu.dot_dimension_numbers<[1], [0], [0], [1], [0, 0, 1, 1], [], []>} : vector<8x32xbf16>, vector<32x8xbf16>, vector<8x8xf32> -> vector<8x8xf32>
    %c0_5 = arith.constant 0 : index
    %c0_6 = arith.constant 0 : index
    %c0_7 = arith.constant 0 : index
    %6 = vector.load %arg6[%c0_5, %c0_6, %c0_7] : memref<1x1x8xf32, #tpu.memory_space<vmem>>, vector<1x1x8xf32>
    %7 = vector.shape_cast %6 : vector<1x1x8xf32> to vector<1x8xf32>
    %8 = vector.broadcast %7 : vector<1x8xf32> to vector<8x8xf32>
    %9 = arith.addf %5, %8 : vector<8x8xf32>
    %c8_i32 = arith.constant 8 : i32
    %10 = arith.muli %arg2, %c8_i32 : i32
    %11 = tpu.assume_multiple %10, 8 : i32
    %c0_8 = arith.constant 0 : index
    %12 = arith.index_cast %11 : i32 to index
    %c0_9 = arith.constant 0 : index
    %13 = vector.load %arg3[%c0_8, %12, %c0_9] : memref<1x8x32xf32, #tpu.memory_space<vmem>>, vector<1x8x32xf32>
    %14 = vector.shape_cast %13 : vector<1x8x32xf32> to vector<8x32xf32>
    %15 = arith.truncf %14 : vector<8x32xf32> to vector<8x32xbf16>
    %c0_10 = arith.constant 0 : index
    %c0_11 = arith.constant 0 : index
    %c0_12 = arith.constant 0 : index
    %16 = vector.load %arg5[%c0_10, %c0_11, %c0_12] : memref<1x32x8xbf16, #tpu.memory_space<vmem>>, vector<1x32x8xbf16>
    %17 = vector.shape_cast %16 : vector<1x32x8xbf16> to vector<32x8xbf16>
    %cst_13 = arith.constant dense<0.000000e+00> : vector<8x8xf32>
    %18 = tpu.matmul %15, %17, %cst_13 {dimension_numbers = #tpu.dot_dimension_numbers<[1], [0], [0], [1], [0, 0, 1, 1], [], []>} : vector<8x32xbf16>, vector<32x8xbf16>, vector<8x8xf32> -> vector<8x8xf32>
    %c0_14 = arith.constant 0 : index
    %c0_15 = arith.constant 0 : index
    %c0_16 = arith.constant 0 : index
    %19 = vector.load %arg7[%c0_14, %c0_15, %c0_16] : memref<1x1x8xf32, #tpu.memory_space<vmem>>, vector<1x1x8xf32>
    %20 = vector.shape_cast %19 : vector<1x1x8xf32> to vector<1x8xf32>
    %21 = vector.broadcast %20 : vector<1x8xf32> to vector<8x8xf32>
    %22 = arith.addf %18, %21 : vector<8x8xf32>
    %cst_17 = arith.constant 0.353553385 : f32
    %23 = vector.broadcast %cst_17 : f32 to vector<8x8xf32>
    %24 = arith.mulf %22, %23 : vector<8x8xf32>
    %25 = arith.truncf %24 : vector<8x8xf32> to vector<8x8xbf16>
    %26 = arith.truncf %9 : vector<8x8xf32> to vector<8x8xbf16>
    %cst_18 = arith.constant dense<0.000000e+00> : vector<8x8xf32>
    %27 = tpu.matmul %25, %26, %cst_18 {dimension_numbers = #tpu.dot_dimension_numbers<[1], [1], [0], [0], [0, 0, 1, 0], [], []>} : vector<8x8xbf16>, vector<8x8xbf16>, vector<8x8xf32> -> vector<8x8xf32>
    %cst_19 = arith.constant dense<0xFF800000> : vector<8xf32>
    %28 = vector.multi_reduction <maximumf>, %27, %cst_19 [1] : vector<8x8xf32> to vector<8xf32>
    %29 = vector.shape_cast %28 : vector<8xf32> to vector<8x1xf32>
    %30 = vector.broadcast %29 : vector<8x1xf32> to vector<8x8xf32>
    %31 = arith.subf %27, %30 : vector<8x8xf32>
    %32 = math.exp %31 : vector<8x8xf32>
    %cst_20 = arith.constant dense<0.000000e+00> : vector<8xf32>
    %33 = vector.multi_reduction <add>, %32, %cst_20 [1] : vector<8x8xf32> to vector<8xf32>
    %34 = vector.shape_cast %33 : vector<8xf32> to vector<8x1xf32>
    %35 = tpu.reciprocal %34 {approx = true} : vector<8x1xf32> -> vector<8x1xf32>
    %36 = vector.broadcast %35 : vector<8x1xf32> to vector<8x8xf32>
    %37 = arith.mulf %32, %36 : vector<8x8xf32>
    %c0_21 = arith.constant 0 : index
    %c0_22 = arith.constant 0 : index
    %c0_23 = arith.constant 0 : index
    %c0_24 = arith.constant 0 : index
    %38 = vector.load %arg10[%c0_21, %c0_22, %c0_23, %c0_24] : memref<1x1x8x8xf32, #tpu.memory_space<vmem>>, vector<1x1x8x8xf32>
    %39 = vector.shape_cast %38 : vector<1x1x8x8xf32> to vector<8x8xf32>
    %40 = vector.shape_cast %37 : vector<8x8xf32> to vector<1x1x8x8xf32>
    tpu.vector_store %arg10[%c0_21, %c0_22, %c0_23, %c0_24], %40 {strides = array<i32>} : memref<1x1x8x8xf32, #tpu.memory_space<vmem>>, vector<1x1x8x8xf32>,
    %41 = arith.truncf %37 : vector<8x8xf32> to vector<8x8xbf16>
    %c0_25 = arith.constant 0 : index
    %c0_26 = arith.constant 0 : index
    %c0_27 = arith.constant 0 : index
    %c0_28 = arith.constant 0 : index
    %42 = vector.load %arg8[%c0_25, %c0_26, %c0_27, %c0_28] : memref<1x1x8x8xbf16, #tpu.memory_space<vmem>>, vector<1x1x8x8xbf16>
    %43 = vector.shape_cast %42 : vector<1x1x8x8xbf16> to vector<8x8xbf16>
    %cst_29 = arith.constant dense<0.000000e+00> : vector<8x8xf32>
    %44 = tpu.matmul %41, %43, %cst_29 {dimension_numbers = #tpu.dot_dimension_numbers<[1], [0], [0], [1], [0, 0, 1, 1], [], []>} : vector<8x8xbf16>, vector<8x8xbf16>, vector<8x8xf32> -> vector<8x8xf32>
    %c0_30 = arith.constant 0 : index
    %c0_31 = arith.constant 0 : index
    %c0_32 = arith.constant 0 : index
    %c0_33 = arith.constant 0 : index
    %45 = vector.load %arg9[%c0_30, %c0_31, %c0_32, %c0_33] : memref<1x1x8x8xf32, #tpu.memory_space<vmem>>, vector<1x1x8x8xf32>
    %46 = vector.shape_cast %45 : vector<1x1x8x8xf32> to vector<8x8xf32>
    %47 = vector.shape_cast %44 : vector<8x8xf32> to vector<1x1x8x8xf32>
    tpu.vector_store %arg9[%c0_30, %c0_31, %c0_32, %c0_33], %47 {strides = array<i32>} : memref<1x1x8x8xf32, #tpu.memory_space<vmem>>, vector<1x1x8x8xf32>,
    return
  }
  func.func @transform_0(%arg0: i32, %arg1: i32, %arg2: i32) -> (i32, i32, i32) {
    %c0_i32 = arith.constant 0 : i32
    %c0_i32_0 = arith.constant 0 : i32
    %c0_i32_1 = arith.constant 0 : i32
    return %arg0, %c0_i32, %c0_i32_0 : i32, i32, i32
  }
  func.func @transform_1(%arg0: i32, %arg1: i32, %arg2: i32) -> (i32, i32, i32) {
    %c0_i32 = arith.constant 0 : i32
    %c0_i32_0 = arith.constant 0 : i32
    %c0_i32_1 = arith.constant 0 : i32
    return %arg1, %c0_i32, %c0_i32_0 : i32, i32, i32
  }
  func.func @transform_2(%arg0: i32, %arg1: i32, %arg2: i32) -> (i32, i32, i32) {
    %c0_i32 = arith.constant 0 : i32
    %c0_i32_0 = arith.constant 0 : i32
    %c0_i32_1 = arith.constant 0 : i32
    return %arg1, %c0_i32, %c0_i32_0 : i32, i32, i32
  }
  func.func @transform_3(%arg0: i32, %arg1: i32, %arg2: i32) -> (i32, i32, i32) {
    %c0_i32 = arith.constant 0 : i32
    %c0_i32_0 = arith.constant 0 : i32
    %c0_i32_1 = arith.constant 0 : i32
    return %arg1, %c0_i32, %c0_i32_0 : i32, i32, i32
  }
  func.func @transform_4(%arg0: i32, %arg1: i32, %arg2: i32) -> (i32, i32, i32) {
    %c0_i32 = arith.constant 0 : i32
    %c0_i32_0 = arith.constant 0 : i32
    %c0_i32_1 = arith.constant 0 : i32
    return %arg1, %c0_i32, %c0_i32_0 : i32, i32, i32
  }
  func.func @transform_5(%arg0: i32, %arg1: i32, %arg2: i32) -> (i32, i32, i32, i32) {
    %c0_i32 = arith.constant 0 : i32
    %c0_i32_0 = arith.constant 0 : i32
    %c0_i32_1 = arith.constant 0 : i32
    return %arg1, %arg0, %c0_i32, %c0_i32_0 : i32, i32, i32, i32
  }
  func.func @transform_6(%arg0: i32, %arg1: i32, %arg2: i32) -> (i32, i32, i32, i32) {
    %c0_i32 = arith.constant 0 : i32
    %c0_i32_0 = arith.constant 0 : i32
    return %arg1, %arg0, %arg2, %c0_i32 : i32, i32, i32, i32
  }
  func.func @transform_7(%arg0: i32, %arg1: i32, %arg2: i32) -> (i32, i32, i32, i32) {
    %c0_i32 = arith.constant 0 : i32
    %c0_i32_0 = arith.constant 0 : i32
    return %arg1, %arg0, %arg2, %c0_i32 : i32, i32, i32, i32
  }
}

</mosaic_0001>

<bundles_post_ra>
// kernel: multi_head_attention.1
= control target key start
LH: loop header
LB: loop body
LE: loop exit
PB: predicated region body
PF: predicated region fallthrough
CT: control target
= control target key end

     0   :  { %s2307_s0 = inlined_call_operand.hbm [shape: f32[2,8,32], index: 0, kind: input, shape index: {}]   ;;  %s2308_s1 = inlined_call_operand.hbm [shape: bf16[4,32,8], index: 1, kind: input, shape index: {}]   ;;  %s2309_s2 = inlined_call_operand.hbm [shape: bf16[4,32,8], index: 2, kind: input, shape index: {}]   ;;  %s2310_s3 = inlined_call_operand.hbm [shape: f32[4,1,8], index: 3, kind: input, shape index: {}]   ;;  %s2311_s4 = inlined_call_operand.hbm [shape: f32[4,1,8], index: 4, kind: input, shape index: {}]   ;;  %s2312_s5 = inlined_call_operand.hbm [shape: bf16[4,2,8,8], index: 5, kind: input, shape index: {}]   ;;  %s2313_s6 = inlined_call_operand.hbm [shape: f32[4,2,8,8], index: 6, kind: output, shape index: {0}]   ;;  %s2314_s7 = inlined_call_operand.hbm [shape: f32[4,2,8,8], index: 7, kind: output, shape index: {1}]  }
   0x1   :  { %2344 = sst [smem:[#allocation35_spill]] %s2308_s1 }
   0x2   :  { %2345 = sst [smem:[#allocation36_spill]] %s2310_s3 }
   0x3   :  { %2346 = sst [smem:[#allocation37_spill]] %s2312_s5 }
   0x4   :  { %2347 = sst [smem:[#allocation38_spill]] %s2313_s6 }
   0x5   :  { %2348 = sst [smem:[#allocation39_spill]] %s2314_s7 }
   0x6   :  { %13 = vsyncpa [#allocation3], 0 }
   0x7   :  { %15 = vsyncpa [#allocation3 + $0x1], 0 }
   0x8   :  { %16 = vsyncpa [#allocation6], 0 }
   0x9   :  { %18 = vsyncpa [#allocation6 + $0x1], 0 }
   0xa   :  { %19 = vsyncpa [#allocation9], 0 }
   0xb   :  { %21 = vsyncpa [#allocation9 + $0x1], 0 }
   0xc   :  { %22 = vsyncpa [#allocation12], 0 }
   0xd   :  { %24 = vsyncpa [#allocation12 + $0x1], 0 }
   0xe   :  { %25 = vsyncpa [#allocation4], 0 }
   0xf   :  { %27 = vsyncpa [#allocation4 + $0x1], 0 }
  0x10   :  { %28 = vsyncpa [#allocation15], 0 }
  0x11   :  { %30 = vsyncpa [#allocation15 + $0x1], 0  ;;  %s1708_s24 = smov 0   ;;  %s1710_s25 = smov 0  }
  0x12   :  { %s1712_s26 = smov 0   ;;  %s1714_s27 = smov 0  }
  0x13   :  { %s1716_s28 = smov 0   ;;  %s1718_s29 = smov 0  }
  0x14   :  { %s1720_s30 = smov 0   ;;  %s1722_s8 = smov 0  }
  0x15   :  { %s1724_s9 = smov 0   ;;  %s1726_s10 = smov 0  }
  0x16   :  { %s1728_s11 = smov 0   ;;  %s1730_s12 = smov 0  }
  0x17   :  { %s1732_s13 = smov 0   ;;  %s1734_s14 = smov 0  }
  0x18 LB: > { %2349 = sst [smem:[#allocation22_spill]] %s1602_s24  ;;  %p2320_p0 = scmp.eq.s32.totalorder %s1654_s14, 0  ;;  %s1654_s14 = sphi %s1734_s14, %s36_s14   ;;  %s1650_s13 = sphi %s1732_s13, %s2433_s13   ;;  %s1646_s12 = sphi %s1730_s12, %s2432_s12   ;;  %s1642_s11 = sphi %s1728_s11, %s2431_s11   ;;  %s1638_s10 = sphi %s1726_s10, %s2430_s10   ;;  %s1634_s9 = sphi %s1724_s9, %s2429_s9   ;;  %s1630_s8 = sphi %s1722_s8, %s2428_s8   ;;  %s1626_s30 = sphi %s1720_s30, %s2427_s30   ;;  %s1622_s29 = sphi %s1718_s29, %s2426_s29   ;;  %s1618_s28 = sphi %s1716_s28, %s2420_s28   ;;  %s1614_s27 = sphi %s1714_s27, %s2419_s27   ;;  %s1610_s26 = sphi %s1712_s26, %s2425_s26   ;;  %s1606_s25 = sphi %s1710_s25, %s2418_s25   ;;  %s1602_s24 = sphi %s1708_s24, %s2417_s24  }
  0x19   : > { %2350 = sst [smem:[#allocation23_spill]] %s1606_s25  ;;  %p95_p1 = scmp.ne.s32.totalorder %s1622_s29, %s1618_s28 }
  0x1a   : > { %2351 = sst [smem:[#allocation24_spill]] %s1610_s26  ;;  %p2319_p3 = scmp.lt.s32.totalorder %s1654_s14, 8 }
  0x1b   : > { %2352 = sst [smem:[#allocation25_spill]] %s1618_s28  ;;  %p97_p4 = por %p95_p1, %p2320_p0 }
  0x1c   : > { %2353 = sst [smem:[#allocation26_spill]] %s1622_s29  ;;  %s1789_s17 = sand.u32 1, %s1622_s29  }
  0x1d   : > { %2354 = sst [smem:[#allocation27_spill]] %s1638_s10  ;;  %s2317_s18 = sshll.u32 %s1789_s17, 4 }
  0x1e   : > { %2355 = sst [smem:[#allocation28_spill]] %s1642_s11  ;;  %s2318_s19 = sshll.u32 %s1646_s12, 8 }
  0x1f   : > { %s2356_s1 = sld [smem:[#allocation35_spill]]  ;;  %s313_s23 = scalar_lea.vmem [#allocation5], %s2317_s18 }
  0x20   : > { %s320_s15 = sshll.u32 %s313_s23, 4  ;;  %p1804_p5 = pnand %p2319_p3, %p97_p4  ;;  %s1808_s15 = int_to_ptr.vmem [resolvable:$true] %s320_s15 }
  0x21   : > { %s2358_s6 = sand.u32 1, %s1654_s14  }
  0x22   : > { %s2357_s16 = scalar_select %p1804_p5, 1, 0 }
  0x23   : > { %s1812_s7 = scalar_lea.sflag [#allocation6], %s2358_s6  ;;  %p1818_p7 = pneg %p1804_p5 }
  0x24   : > { %2359 = sst [smem:[#allocation29_spill]] %s1812_s7 }
  0x25   : > { %s1798_s22 = scalar_lea.hbm %s2356_s1, %s2318_s19  ;;  %s1289_s19 = scalar_lea.hbm %s2356_s1, 1024 }
  0x26   : > { %s1284_s20 = scalar_lea.hbm %s1798_s22, 256  ;;  %p1290_p10 = scmp.lt.u32.totalorder %s1798_s22, %s2356_s1 }
  0x27   : > { %p1285_p6 = scmp.ne.s32.totalorder %s1798_s22, %s1284_s20  ;;  %p1291_p11 = scmp.lt.u32.totalorder %s1289_s19, %s1284_s20 }
  0x28   : > { %p1293_p13 = scmp.lt.u32.totalorder %s1284_s20, %s1798_s22 }
  0x29   : > { %p1287_p8 = pnand %p1818_p7, %p1285_p6  ;;  %p1292_p12 = por %p1291_p11, %p1290_p10 }
  0x2b   : > { %p1288_p9 = pneg %p1287_p8  ;;  %p1294_p1 = por %p1293_p13, %p1292_p12 }
  0x2d   : > { %p1295_p4 = pnand %p1294_p1, %p1288_p9 }
  0x2f   : > { %1298 = shalt.err (!%p1295_p4)
}
  0x30   : > { %s1299_s6 = scalar_lea.vmem %s1808_s15, 256  ;;  %s1656_s18 = smov [#allocation5]  }
  0x31   : > { %p1300_p6 = scmp.ne.s32.totalorder %s1808_s15, %s1299_s6  ;;  %s1304_s23 = sshll.u32 %s1656_s18, 4  ;;  %s1305_s23 = int_to_ptr.vmem [resolvable:$false] %s1304_s23 }
  0x32   : > { %s1306_s10 = scalar_lea.vmem %s1305_s23, 512  ;;  %p1307_p2 = scmp.lt.s32.totalorder %s1808_s15, %s1305_s23 }
  0x33   : > { %p1302_p8 = pnand %p1300_p6, %p1818_p7  ;;  %p1308_p0 = scmp.lt.s32.totalorder %s1306_s10, %s1299_s6 }
  0x35   : > { %p1303_p3 = pneg %p1302_p8  ;;  %p1309_p10 = por %p1308_p0, %p1307_p2 }
  0x37   : > { %p1310_p11 = pnand %p1309_p10, %p1303_p3 }
  0x39   : > { %1313 = shalt.err (!%p1310_p11)
}
  0x3a   : > { %s2324_s11 = smov 64   ;;  %s2325_s19 = smov 4  }
  0x3b   : > { %1138 = dma.hbm_to_vmem [thread:$0]  (!%p1804_p5), %s1798_s22, 256, %s1808_s15, %s1812_s7, %s2324_s11, %s2324_s11, %s2325_s19  }
  0x3c   : > { %s2361_s20 = sshll.u32 %s1646_s12, 8  ;;  %s2362_s10 = sshll.u32 %s1789_s17, 4 }
  0x3d   : > { %s1850_s23 = scalar_lea.hbm %s2309_s2, %s2361_s20  ;;  %s334_s1 = scalar_lea.vmem [#allocation7], %s2362_s10 }
  0x3e   : > { %s341_s5 = sshll.u32 %s334_s1, 4  ;;  %p1051_p0 = scmp.ge.s32.totalorder %s1654_s14, 1  ;;  %s1855_s5 = int_to_ptr.vmem [resolvable:$true] %s341_s5 }
  0x3f   : > { %p403_p2 = scmp.lt.s32.totalorder %s1654_s14, 9  ;;  %s1046_s24 = sshll.u32 %s1646_s12, 4 }
  0x40   : > { %s2365_s3 = sld [smem:[#allocation36_spill]]  ;;  %s354_s20 = scalar_lea.vmem [#allocation8], %s1789_s17 }
  0x41   : > { %p1858_p3 = pnand %p1051_p0, %p403_p2  ;;  %s361_s1 = sshll.u32 %s354_s20, 4  ;;  %s1869_s1 = int_to_ptr.vmem [resolvable:$true] %s361_s1 }
  0x42   : > { %s1874_s10 = scalar_lea.hbm %s2311_s4, %s1046_s24  ;;  %s2366_s19 = sand.u32 1, %s1654_s14  }
  0x43   : > { %s2363_s29 = scalar_select %p1858_p3, 1, 0 }
  0x45   : > { %2364 = sst [smem:[#allocation30_spill]] %s2363_s29  ;;  %s1878_s29 = scalar_lea.sflag [#allocation9], %s2366_s19 }
  0x46   : > { %s1866_s11 = scalar_lea.hbm %s2365_s3, %s1046_s24  ;;  %s1319_s26 = scalar_lea.hbm %s2365_s3, 64 }
  0x47   : > { %s1314_s25 = scalar_lea.hbm %s1866_s11, 16  ;;  %p1320_p1 = scmp.lt.u32.totalorder %s1866_s11, %s2365_s3 }
  0x48   : > { %p1315_p9 = scmp.ne.s32.totalorder %s1866_s11, %s1314_s25  ;;  %p1321_p4 = scmp.lt.u32.totalorder %s1319_s26, %s1314_s25 }
  0x49   : > { %p1323_p8 = scmp.lt.u32.totalorder %s1314_s25, %s1866_s11 }
  0x4a   : > { %p1317_p12 = pnand %p1315_p9, %p1818_p7  ;;  %p1322_p6 = por %p1321_p4, %p1320_p1 }
  0x4c   : > { %p1318_p13 = pneg %p1317_p12  ;;  %p1324_p10 = por %p1323_p8, %p1322_p6 }
  0x4e   : > { %p1325_p11 = pnand %p1324_p10, %p1318_p13 }
  0x50   : > { %1328 = shalt.err (!%p1325_p11)
}
  0x51   : > { %s1329_s24 = scalar_lea.vmem %s1869_s1, 16  ;;  %s1659_s19 = smov [#allocation8]  }
  0x52   : > { %p1330_p0 = scmp.ne.s32.totalorder %s1869_s1, %s1329_s24  ;;  %s1334_s6 = sshll.u32 %s1659_s19, 4  ;;  %s1335_s6 = int_to_ptr.vmem [resolvable:$false] %s1334_s6 }
  0x53   : > { %s1336_s7 = scalar_lea.vmem %s1335_s6, 32  ;;  %p1337_p12 = scmp.lt.s32.totalorder %s1869_s1, %s1335_s6 }
  0x54   : > { %p1332_p2 = pnand %p1330_p0, %p1818_p7  ;;  %p1338_p3 = scmp.lt.s32.totalorder %s1336_s7, %s1329_s24 }
  0x56   : > { %p1333_p9 = pneg %p1332_p2  ;;  %p1339_p1 = por %p1338_p3, %p1337_p12 }
  0x58   : > { %p1340_p4 = pnand %p1339_p1, %p1333_p9 }
  0x5a   : > { %1343 = shalt.err (!%p1340_p4)
}
  0x5b   : > { %1144 = dma.hbm_to_vmem [thread:$0]  (!%p1804_p5), %s1866_s11, 16, %s1869_s1, %s1878_s29  }
  0x5c   : > { %s1903_s25 = sadd.s32 4294967295, %s1654_s14   ;;  %s2330_s26 = sadd.s32 1, %s1646_s12 }
  0x5d   : > { %p1908_p3 = scmp.ge.s32.totalorder %s2330_s26, 4  ;;  %s55_s15 = sadd.s32 1, %s1650_s13 }
  0x5e   : > { %s62_s22 = sadd.s32 1, %s1634_s9  ;;  %p69_p13 = scmp.ne.s32.totalorder %s1634_s9, %s1630_s8 }
  0x5f   : > { %s2367_s18 = scalar_select %p1908_p3, 1, 0 }
  0x60   : > { %s2435_s15 = smov (!%p1908_p3, %s55_s15), %s1650_s13  ;;  %p2368_p6 = scmp.eq.s32.totalorder %s1654_s14, 0 }
  0x61   : > { %p75_p10 = scmp.ne.s32.totalorder %s1630_s8, %s1626_s30  ;;  %p57_p11 = scmp.ge.s32.totalorder %s2435_s15, 2 }
  0x62   : > { %p1921_p8 = por %p2368_p6, %p69_p13  ;;  %p2337_p0 = scmp.eq.s32.totalorder %s1903_s25, 0 }
  0x63   : > { %s291_s1 = sand.u32 1, %s1634_s9   ;;  %s1039_s20 = sshll.u32 %s1650_s13, 7 }
  0x64   : > { %s2437_s15 = smov (%p57_p11, %s2435_s15), 0  ;;  %p1934_p2 = por %p2337_p0, %p75_p10 }
  0x65   : > { %2370 = sst [smem:[#allocation31_spill]] %s2437_s15  ;;  %p2373_p9 = scmp.ne.s32.totalorder %s1618_s28, %s1614_s27 }
  0x66   : > { %s2371_s24 = scalar_select %p1934_p2, 1, 0 }
  0x67   : > { %p1943_p12 = por %p2373_p9, %p2337_p0  ;;  %s1949_s30 = ssub.s32 %s1650_s13, %s2437_s15 }
  0x68   : > { %2372 = sst [smem:[#allocation32_spill]] %s2371_s24  ;;  %p60_p1 = scmp.eq.s32.totalorder %s1949_s30, 0 }
  0x69   : > { %s2374_s19 = scalar_select %p1943_p12, 1, 0 }
  0x6a   : > { %s1038_s6 = sshll.u32 %s291_s1, 3  ;;  %s1955_s3 = scalar_lea.hbm %s2307_s0, %s1039_s20 }
  0x6b   : > { %2375 = sst [smem:[#allocation33_spill]] %s2374_s19  ;;  %s295_s27 = scalar_lea.vmem [#allocation2], %s1038_s6 }
  0x6c   : > { %s1958_s24 = scalar_select %p60_p1, %s1634_s9, %s62_s22  }
  0x6d   : > { %s302_s28 = sshll.u32 %s295_s27, 4  ;;  %p2377_p4 = scmp.lt.s32.totalorder %s1654_s14, 8  ;;  %s1968_s28 = int_to_ptr.vmem [resolvable:$true] %s302_s28 }
  0x6e   : > { %2376 = sst [smem:[#allocation34_spill]] %s1958_s24  ;;  %s371_s26 = scalar_lea.vmem [#allocation10], %s1789_s17 }
  0x6f   : > { %p1964_p13 = pnand %p2377_p4, %p1921_p8  ;;  %s1971_s20 = sshll.u32 %s371_s26, 4  ;;  %s379_s20 = int_to_ptr.vmem [resolvable:$true] %s1971_s20 }
  0x70   : > { %s292_s7 = scalar_lea.sflag [#allocation3], %s291_s1  ;;  %s1344_s19 = scalar_lea.hbm %s1955_s3, 128 }
  0x71   : > { %p1345_p6 = scmp.ne.s32.totalorder %s1955_s3, %s1344_s19  ;;  %p1346_p10 = pneg %p1964_p13 }
  0x72   : > { %s1349_s6 = scalar_lea.hbm %s2307_s0, 256  ;;  %p1350_p8 = scmp.lt.u32.totalorder %s1955_s3, %s2307_s0 }
  0x73   : > { %p1347_p11 = pnand %p1346_p10, %p1345_p6  ;;  %p1351_p1 = scmp.lt.u32.totalorder %s1349_s6, %s1344_s19 }
  0x74   : > { %p1353_p0 = scmp.lt.u32.totalorder %s1344_s19, %s1955_s3 }
  0x75   : > { %p1348_p9 = pneg %p1347_p11  ;;  %p1352_p4 = por %p1351_p1, %p1350_p8 }
  0x77   : > { %p1354_p12 = por %p1353_p0, %p1352_p4 }
  0x79   : > { %p1355_p2 = pnand %p1354_p12, %p1348_p9 }
  0x7b   : > { %1358 = shalt.err (!%p1355_p2)
}
  0x7c   : > { %s1359_s17 = scalar_lea.vmem %s1968_s28, 128  ;;  %s1660_s1 = smov [#allocation2]  }
  0x7d   : > { %p1360_p6 = scmp.ne.s32.totalorder %s1968_s28, %s1359_s17  ;;  %s1364_s26 = sshll.u32 %s1660_s1, 4  ;;  %s1365_s26 = int_to_ptr.vmem [resolvable:$false] %s1364_s26 }
  0x7e   : > { %s1366_s24 = scalar_lea.vmem %s1365_s26, 256  ;;  %p1367_p5 = scmp.lt.s32.totalorder %s1968_s28, %s1365_s26 }
  0x7f   : > { %p1362_p11 = pnand %p1360_p6, %p1346_p10  ;;  %p1368_p8 = scmp.lt.s32.totalorder %s1366_s24, %s1359_s17 }
  0x81   : > { %p1363_p3 = pneg %p1362_p11  ;;  %p1369_p1 = por %p1368_p8, %p1367_p5 }
  0x83   : > { %p1370_p0 = pnand %p1369_p1, %p1363_p3 }
  0x85   : > { %1373 = shalt.err (!%p1370_p0)
}
  0x86   : > { %1135 = dma.hbm_to_vmem [thread:$0]  (!%p1964_p13), %s1955_s3, 128, %s1968_s28, %s292_s7  }
  0x87   : > { %s1374_s19 = scalar_lea.hbm %s1850_s23, 256  ;;  %s1379_s6 = scalar_lea.hbm %s2309_s2, 1024 }
  0x88   : > { %p1375_p2 = scmp.ne.s32.totalorder %s1850_s23, %s1374_s19  ;;  %p1380_p5 = scmp.lt.u32.totalorder %s1850_s23, %s2309_s2 }
  0x89   : > { %p1381_p3 = scmp.lt.u32.totalorder %s1379_s6, %s1374_s19  ;;  %p1383_p4 = scmp.lt.u32.totalorder %s1374_s19, %s1850_s23 }
  0x8a   : > { %p1377_p12 = pnand %p1375_p2, %p1818_p7 }
  0x8b   : > { %p1382_p9 = por %p1381_p3, %p1380_p5 }
  0x8c   : > { %p1378_p10 = pneg %p1377_p12 }
  0x8d   : > { %p1384_p6 = por %p1383_p4, %p1382_p9 }
  0x8f   : > { %p1385_p11 = pnand %p1384_p6, %p1378_p10 }
  0x91   : > { %1388 = shalt.err (!%p1385_p11)
}
  0x92   : > { %s1389_s3 = scalar_lea.vmem %s1855_s5, 256  ;;  %s1661_s28 = smov [#allocation7]  }
  0x93   : > { %p1390_p13 = scmp.ne.s32.totalorder %s1855_s5, %s1389_s3  ;;  %s1394_s15 = sshll.u32 %s1661_s28, 4  ;;  %s1395_s15 = int_to_ptr.vmem [resolvable:$false] %s1394_s15 }
  0x94   : > { %s1396_s7 = scalar_lea.vmem %s1395_s15, 512  ;;  %p1397_p0 = scmp.lt.s32.totalorder %s1855_s5, %s1395_s15 }
  0x95   : > { %p1392_p8 = pnand %p1390_p13, %p1818_p7  ;;  %p1398_p2 = scmp.lt.s32.totalorder %s1396_s7, %s1389_s3 }
  0x97   : > { %p1393_p1 = pneg %p1392_p8  ;;  %p1399_p12 = por %p1398_p2, %p1397_p0 }
  0x99   : > { %p1400_p5 = pnand %p1399_p12, %p1393_p1 }
  0x9b   : > { %1403 = shalt.err (!%p1400_p5)
}
  0x9c   : > { %p2379_p10 = scmp.ne.s32.totalorder %s2357_s16, 0  ;;  %s2380_s1 = smov 4  }
  0x9d   : > { %s2381_s26 = smov 64   ;;  %s2382_s24 = sld [smem:[#allocation29_spill]] }
  0x9e   : > { %s1404_s19 = scalar_lea.hbm %s1874_s10, 16  ;;  %s1409_s6 = scalar_lea.hbm %s2311_s4, 64 }
  0x9f   : > { %p1405_p3 = scmp.ne.s32.totalorder %s1874_s10, %s1404_s19  ;;  %p1410_p6 = scmp.lt.u32.totalorder %s1874_s10, %s2311_s4 }
  0xa0   : > { %p1411_p11 = scmp.lt.u32.totalorder %s1409_s6, %s1404_s19  ;;  %p1413_p8 = scmp.lt.u32.totalorder %s1404_s19, %s1874_s10 }
  0xa1   : > { %p1407_p9 = pnand %p1405_p3, %p1818_p7 }
  0xa2   : > { %p1412_p13 = por %p1411_p11, %p1410_p6 }
  0xa3   : > { %1141 = dma.hbm_to_vmem [thread:$0]  (!%p2379_p10), %s1850_s23, 256, %s1855_s5, %s2382_s24, %s2381_s26, %s2381_s26, %s2380_s1  }
  0xa4   : > { %p1408_p4 = pneg %p1407_p9  ;;  %p1414_p1 = por %p1413_p8, %p1412_p13 }
  0xa6   : > { %p1415_p0 = pnand %p1414_p1, %p1408_p4 }
  0xa8   : > { %1418 = shalt.err (!%p1415_p0)
}
  0xa9   : > { %s1419_s5 = scalar_lea.vmem %s379_s20, 16  ;;  %s1662_s23 = smov [#allocation10]  }
  0xaa   : > { %p1420_p2 = scmp.ne.s32.totalorder %s379_s20, %s1419_s5  ;;  %s1424_s3 = sshll.u32 %s1662_s23, 4  ;;  %s1425_s3 = int_to_ptr.vmem [resolvable:$false] %s1424_s3 }
  0xab   : > { %s1426_s28 = scalar_lea.vmem %s1425_s3, 32  ;;  %p1427_p3 = scmp.lt.s32.totalorder %s379_s20, %s1425_s3 }
  0xac   : > { %p1422_p12 = pnand %p1420_p2, %p1818_p7  ;;  %p1428_p9 = scmp.lt.s32.totalorder %s1426_s28, %s1419_s5 }
  0xae   : > { %p1423_p5 = pneg %p1422_p12  ;;  %p1429_p10 = por %p1428_p9, %p1427_p3 }
  0xb0   : > { %p1430_p6 = pnand %p1429_p10, %p1423_p5 }
  0xb2   : > { %1433 = shalt.err (!%p1430_p6)
}
  0xb3   : > { %p2383_p11 = scmp.ne.s32.totalorder %s2357_s16, 0  ;;  %s2384_s15 = sld [smem:[#allocation24_spill]] }
  0xb4   : > { %s2385_s21 = sld [smem:[#allocation23_spill]]  ;;  %s2386_s7 = sld [smem:[#allocation22_spill]] }
  0xb5   : > { %s2387_s1 = sld [smem:[#allocation26_spill]]  ;;  %s1035_s16 = sadd.s32 4294967294, %s1654_s14  }
  0xb6   : > { %1147 = dma.hbm_to_vmem [thread:$0]  (!%p2383_p11), %s1874_s10, 16, %s379_s20, %s1878_s29  }
  0xb7   : > { %s2388_s26 = sadd.s32 1, %s1646_s12  ;;  %p2389_p7 = scmp.ne.s32.totalorder %s2367_s18, 0 }
  0xb8   : > { %p2390_p1 = scmp.eq.s32.totalorder %s1654_s14, 0  ;;  %p2393_p2 = scmp.eq.s32.totalorder %s1903_s25, 0 }
  0xb9   : > { %s2439_s26 = smov (%p2389_p7, %s2388_s26), 0  ;;  %s194_s24 = sadd.s32 1, %s2384_s15 }
  0xba   : > { %p201_p10 = scmp.ne.s32.totalorder %s2384_s15, %s2385_s21  ;;  %s85_s19 = ssub.s32 %s1646_s12, %s2439_s26 }
  0xbb   : > { %p207_p4 = scmp.ne.s32.totalorder %s2385_s21, %s2386_s7  ;;  %p86_p13 = scmp.eq.s32.totalorder %s85_s19, 0 }
  0xbc   : > { %s191_s22 = sor.u32 %s85_s19, %s1949_s30  ;;  %p2062_p0 = por %p201_p10, %p2390_p1 }
  0xbd   : > { %p192_p8 = scmp.eq.s32.totalorder %s191_s22, 0  ;;  %s2392_s10 = sadd.s32 1, %s2387_s1 }
  0xbe   : > { %s2441_s1 = smov (!%p86_p13, %s2387_s1), %s2392_s10  ;;  %p2076_p12 = por %p207_p4, %p2393_p2 }
  0xbf   : > { %s2072_s18 = scalar_select %p192_p8, %s2384_s15, %s194_s24  }
  0xc0   : > { %p235_p5 = scmp.eq.s32.totalorder %s1903_s25, 7  ;;  %p241_p3 = scmp.eq.s32.totalorder %s1035_s16, 7 }
  0xc1   : > { %s385_s30 = sand.u32 1, %s2384_s15   ;;  %s1049_s17 = sshll.u32 %s1646_s12, 1 }
  0xc2   : > { %p2085_p9 = por %p235_p5, %p201_p10  ;;  %p2089_p6 = por %p241_p3, %p207_p4 }
  0xc3   : > { %s1048_s27 = sshll.u32 %s385_s30, 2  ;;  %s394_s5 = sadd.s32 %s1650_s13, %s1049_s17 }
  0xc4   : > { %s2395_s11 = scalar_select %p2085_p9, 1, 0 }
  0xc5   : > { %s2396_s6 = scalar_select %p2089_p6, 1, 0 }
  0xc6   : > { %s389_s23 = scalar_lea.vmem [#allocation11], %s1048_s27  ;;  %s1050_s28 = sshll.u32 %s394_s5, 6 }
  0xc7   : > { %s398_s3 = sshll.u32 %s389_s23, 4  ;;  %s2397_s24 = sld [smem:[#allocation37_spill]]  ;;  %s2095_s3 = int_to_ptr.vmem [resolvable:$true] %s398_s3 }
  0xc8   : > { %p2399_p11 = scmp.lt.s32.totalorder %s1654_s14, 8  ;;  %s386_s22 = scalar_lea.sflag [#allocation12], %s385_s30 }
  0xca   : > { %p2106_p7 = pnand %p2399_p11, %p2062_p0 }
  0xcc   : > { %p1436_p4 = pneg %p2106_p7 }
  0xcd   : > { %s2398_s19 = smov %s2397_s24  ;;  %s2100_s15 = scalar_lea.hbm %s2397_s24, %s1050_s28 }
  0xce   : > { %s1434_s10 = scalar_lea.hbm %s2100_s15, 64  ;;  %s1439_s17 = scalar_lea.hbm %s2398_s19, 512 }
  0xcf   : > { %p1435_p10 = scmp.ne.s32.totalorder %s2100_s15, %s1434_s10  ;;  %p1440_p1 = scmp.lt.u32.totalorder %s2100_s15, %s2398_s19 }
  0xd0   : > { %p1441_p0 = scmp.lt.u32.totalorder %s1439_s17, %s1434_s10  ;;  %p1443_p5 = scmp.lt.u32.totalorder %s1434_s10, %s2100_s15 }
  0xd1   : > { %p1437_p13 = pnand %p1436_p4, %p1435_p10 }
  0xd2   : > { %p1442_p2 = por %p1441_p0, %p1440_p1 }
  0xd3   : > { %p1438_p8 = pneg %p1437_p13 }
  0xd4   : > { %p1444_p3 = por %p1443_p5, %p1442_p2 }
  0xd6   : > { %p1445_p11 = pnand %p1444_p3, %p1438_p8 }
  0xd8   : > { %1448 = shalt.err (!%p1445_p11)
}
  0xd9   : > { %s1449_s30 = scalar_lea.vmem %s2095_s3, 64  ;;  %s1663_s28 = smov [#allocation11]  }
  0xda   : > { %p1450_p10 = scmp.ne.s32.totalorder %s2095_s3, %s1449_s30  ;;  %s1454_s7 = sshll.u32 %s1663_s28, 4  ;;  %s1455_s7 = int_to_ptr.vmem [resolvable:$false] %s1454_s7 }
  0xdb   : > { %s1456_s16 = scalar_lea.vmem %s1455_s7, 128  ;;  %p1457_p9 = scmp.lt.s32.totalorder %s2095_s3, %s1455_s7 }
  0xdc   : > { %p1452_p13 = pnand %p1450_p10, %p1436_p4  ;;  %p1458_p1 = scmp.lt.s32.totalorder %s1456_s16, %s1449_s30 }
  0xde   : > { %p1453_p6 = pneg %p1452_p13  ;;  %p1459_p0 = por %p1458_p1, %p1457_p9 }
  0xe0   : > { %p1460_p2 = pnand %p1459_p0, %p1453_p6 }
  0xe2   : > { %1463 = shalt.err (!%p1460_p2)
}
  0xe3   : > { %1150 = dma.hbm_to_vmem [thread:$0]  (!%p2106_p7), %s2100_s15, 64, %s2095_s3, %s386_s22  }
  0xe4   : > { %s2401_s24 = sld [smem:[#allocation30_spill]] }
  0xea   : > { %p2402_p8 = scmp.ne.s32.totalorder %s2401_s24, 0 }
  0xeb   : > { %s2403_s10 = sld [smem:[#allocation32_spill]] (!%p2402_p8)  ;;  %s409_s29 = sand.u32 (!%p2402_p8), 1, %s1630_s8  }
  0xec   : > { %407 = sbr.rel (%p2402_p8) target bundleno = 1256 (0x4e8), region = 44  ;;  %s2138_s27 = sshll.u32 (!%p2402_p8), %s409_s29, 3 }
  0xed   : > { %s410_s17 = scalar_lea.sflag (!%p2402_p8), [#allocation3], %s409_s29  ;;  %s413_s5 = scalar_lea.vmem (!%p2402_p8), [#allocation2], %s2138_s27 }
  0xf1   : > { %p2404_p4 = scmp.ne.s32.totalorder (!%p2402_p8), %s2403_s10, 0 }
  0xf3   : > { %1577 = dma.done.wait (%p2404_p4), %s410_s17, 128  }
  0xf4   : > { %1579 = vsyncadd (%p2404_p4), %s410_s17, 4294967168  ;;  %s2405_s21 = sld [smem:[#allocation25_spill]]  ;;  %s2406_s23 = sld [smem:[#allocation33_spill]] }
  0xf5   : > { %s418_s3 = sand.u32 1, %s1903_s25  }
  0xf6   : > { %s419_s30 = scalar_lea.sflag [#allocation6], %s418_s3 }
  0xfa   : > { %s2147_s15 = sand.u32 1, %s2405_s21   ;;  %p2407_p9 = scmp.ne.s32.totalorder %s2406_s23, 0 }
  0xfb   : > { %s1053_s22 = sshll.u32 %s2147_s15, 4 }
  0xfc   : > { %s422_s28 = scalar_lea.vmem [#allocation5], %s1053_s22 }
  0xfd   : > { %1581 = dma.done.wait (%p2407_p9), %s419_s30, 512  }
  0xfe   : > { %1583 = vsyncadd (%p2407_p9), %s419_s30, 4294966784  ;;  %s431_s7 = scalar_lea.vmem [#allocation7], %s1053_s22  ;;  %s437_s16 = scalar_lea.sflag [#allocation9], %s418_s3 }
  0xff   : > { %s439_s24 = scalar_lea.vmem [#allocation8], %s2147_s15 }
 0x100   : > { %1585 = dma.done.wait (%p2407_p9), %s437_s16, 32  }
 0x101   : > { %1587 = vsyncadd (%p2407_p9), %s437_s16, 4294967264  ;;  %s2408_s25 = sld [smem:[#allocation23_spill]]  ;;  %s447_s17 = scalar_lea.vmem [#allocation10], %s2147_s15 }
 0x107   : > { %s2160_s10 = sand.u32 1, %s2408_s25  }
 0x108   : > { %s1055_s29 = sshll.u32 %s2160_s10, 2  ;;  %s453_s21 = scalar_lea.sflag [#allocation12], %s2160_s10 }
 0x109   : > { %s2165_s30 = scalar_lea.vmem [#allocation11], %s1055_s29 }
 0x10a   : > { %1589 = dma.done.wait (%p2076_p12), %s453_s21, 64  }
 0x10b   : > { %1591 = vsyncadd (%p2076_p12), %s453_s21, 4294967232  ;;  %v1664_v0 = vmov 0.0   ;;  %vm1665_vm0 = vmmov 0   ;;  %v1276_v1 = vld [vmem:[%s422_s28] sm:$0xff]   ;;  %v1277_v2 = vld [vmem:[%s422_s28 + $0x8] sm:$0xff]   ;;  %vm541_vm1 = vcmask 261120  }
 0x10c   : > { %1088 = vmatprep.subr.bf16.mxu0 %v1664_v0  ;;  %1096 = vmatprep.subr.bf16.mxu1 %v1664_v0  ;;  %v1278_v3 = vld [vmem:[%s431_s7] sm:$0xff]   ;;  %v516_v4 = vld [vmem:[%s413_s5] sm:$0xff]  ;;  %vm658_vm2 = vcmask 64512   ;;  %s2409_s20 = sld [smem:[#allocation27_spill]]  ;;  %s2410_s27 = sld [smem:[#allocation28_spill]]  ;;  %vm722_vm3 = vcmask 1043456  }
 0x10d   : > { %1092 = vmatprep.mubr.msk.bf16.mxu0 %vm1665_vm0, %v1664_v0  ;;  %1100 = vmatprep.mubr.msk.bf16.mxu1 %vm1665_vm0, %v1664_v0  ;;  %v1279_v5 = vld [vmem:[%s431_s7 + $0x8] sm:$0xff]   ;;  %v517_v6 = vpack.c.bf16 %v516_v4, %v516_v4  ;;  %v1058_v7 = vld [vmem:[%s439_s24] ss:$0 sm:$0xff]  ;;  %v718_v33 = vld [vmem:[%s2165_s30] sm:$0xf]  ;;  %s1056_s5 = sshll.u32 %s2160_s10, 3 }
 0x10e   : > { %1089 = vmatpush3.bf16.msra.mxu0 %v1276_v1  ;;  %1097 = vmatpush3.bf16.msra.mxu1 %v1278_v3  ;;  %v1062_v9 = vld [vmem:[%s447_s17] ss:$0 sm:$0xff]  ;;  %v724_v34 = vsel %vm722_vm3, %v718_v33, 0  ;;  %s514_s23 = scalar_lea.vmem [#allocation14], %s1056_s5  ;;  %s2411_s16 = sld [smem:[#allocation39_spill]] }
 0x10f   : > { %1090 = vmatprep.subr.bf16.mxu0 %v1664_v0  ;;  %1098 = vmatprep.subr.bf16.mxu1 %v1664_v0  ;;  %s805_s25 = sshll.u32 %s514_s23, 4  ;;  %s773_s29 = scalar_lea.sflag [#allocation15], %s2160_s10  ;;  %s806_s25 = int_to_ptr.vmem [resolvable:$true] %s805_s25 }
 0x110   : > { %s1464_s17 = scalar_lea.vmem %s806_s25, 128  ;;  %p2412_p6 = scmp.ne.s32.totalorder %s2395_s11, 0 }
 0x111   : > { %p1465_p12 = scmp.ne.s32.totalorder %s806_s25, %s1464_s17  ;;  %s1666_s21 = smov [#allocation14]  }
 0x112   : > { %1091 = vmatpush3.bf16.msra.mxu0 %v1277_v2  ;;  %1099 = vmatpush3.bf16.msra.mxu1 %v1279_v5  ;;  %s1070_s3 = sshll.u32 %s2409_s20, 1  ;;  %s1468_s30 = sshll.u32 %s1666_s21, 4  ;;  %s1469_s30 = int_to_ptr.vmem [resolvable:$false] %s1468_s30 }
 0x113   : > { %1104 = vmatprep.subr.bf16.mxu0 %v1664_v0  ;;  %1110 = vmatprep.subr.bf16.mxu1 %v1664_v0  ;;  %s2193_s15 = sadd.s32 %s2410_s27, %s1070_s3  ;;  %p1466_p7 = pnand %p1465_p12, %p2412_p6 }
 0x114   : > { %s1071_s22 = sshll.u32 %s2193_s15, 7  ;;  %s1470_s20 = scalar_lea.vmem %s1469_s30, 256 }
 0x115   : > { %1093 = vmatmul.mubr.msk.bf16.vlgmr.msra.gmra.mrb[0].mxu0 %vm541_vm1, %v517_v6  ;;  %1101 = vmatmul.mubr.msk.bf16.vlgmr.msra.gmra.mrb[0].mxu1 %vm541_vm1, %v517_v6  ;;  %s2201_s24 = scalar_lea.hbm %s2411_s16, %s1071_s22  ;;  %p1467_p5 = pneg %p1466_p7 }
 0x116   : > { %1106 = vmatprep.mubr.msk.bf16.mxu0 %vm1665_vm0, %v1664_v0  ;;  %1112 = vmatprep.mubr.msk.bf16.mxu1 %vm1665_vm0, %v1664_v0  ;;  %p1471_p3 = scmp.lt.s32.totalorder %s806_s25, %s1469_s30  ;;  %p1472_p11 = scmp.lt.s32.totalorder %s1470_s20, %s1464_s17 }
 0x117   : > { %1111 = vmatpush3.bf16.msra.mxu1 %v724_v34 }
 0x118   : > { %p1473_p10 = por %p1472_p11, %p1471_p3 }
 0x11a   : > { %p1474_p13 = pnand %p1473_p10, %p1467_p5 }
 0x1e8   : > { %v579_v8 = vpop.f32.mrb[0].mxu0  ;;  %v649_v13 = vpop.f32.mrb[0].mxu1 }
 0x1e9   : > { %v580_v10 = vadd.f32 %v1058_v7, %v579_v8  ;;  %v1094_v11 = vpop.f32.mrb[1].mxu0  ;;  %v650_v16 = vadd.f32 %v1062_v9, %v649_v13  ;;  %v1102_v17 = vpop.f32.mrb[1].mxu1 }
 0x1ea   : > { %v582_v12 = vpop.f32.mrb[2].mxu0  ;;  %v652_v18 = vpop.f32.mrb[2].mxu1 }
 0x1eb   : > { %v657_v14 = vpack.c.bf16 %v580_v10, %v580_v10  ;;  %v1095_v15 = vpop.f32.mrb[3].mxu0  ;;  %v655_v20 = vmul.f32 0.35355338, %v650_v16  ;;  %v1103_v21 = vpop.f32.mrb[3].mxu1 }
 0x1ed   : > { %v663_v19 = vsel %vm658_vm2, %v657_v14, 0  ;;  %v656_v22 = vpack.c.bf16 %v655_v20, %v655_v20 }
 0x1ee   : > { %1105 = vmatpush3.bf16.xpose.msra.mxu0 %v663_v19 }
 0x1f5   : > { %1107 = vmatmul.mubr.msk.bf16.vlgmr.msra.gmra.mrb[4].mxu0 %vm658_vm2, %v656_v22 }
 0x2c8   : > { %v699_v23 = vpop.f32.mrb[4].mxu0 }
 0x2c9   : > { %v1108_v24 = vpop.f32.mrb[5].mxu0  ;;  %v705_v25 = vsel %vm658_vm2, %v699_v23, -inf }
 0x2ca   : > { %706 = vmax.xlane.f32.xlu0 %v705_v25  ;;  %v702_v26 = vpop.f32.mrb[6].mxu0 }
 0x2cb   : > { %v1109_v27 = vpop.f32.mrb[7].mxu0 }
 0x357   : > { %v707_v28 = vpop.xlane.xlu0 %706 }
 0x358   : > { %v708_v29 = vsub.f32 %v699_v23, %v707_v28 }
 0x35a   : > { %v709_v30 = vmul.f32 1.442695, %v708_v29 }
 0x35c   : > { %1280 = vpow2.f32 %v709_v30 }
 0x366   : > { %v1281_v31 = vpop.eup %1280 }
 0x367   : > { %v711_v32 = vsel %vm658_vm2, %v1281_v31, 0.0 }
 0x368   : > { %712 = vadd.xlane.f32.xlu0 %v711_v32 }
 0x3f5   : > { %v713_v35 = vpop.xlane.xlu0 %712 }
 0x3f6   : > { %1282 = vrcp.f32 %v713_v35 }
 0x400   : > { %v1283_v36 = vpop.eup %1282 }
 0x401   : > { %v715_v37 = vmul.f32 %v1283_v36, %v1281_v31 }
 0x403   : > { %v717_v38 = vpack.c.bf16 %v715_v37, %v715_v37  ;;  %716 = vst.msk [vmem:[%s514_s23] sm:$0xff] %vm658_vm2, %v715_v37 }
 0x405   : > { %1113 = vmatmul.mubr.msk.bf16.vlgmr.msra.gmra.mrb[4].mxu1 %vm658_vm2, %v717_v38 }
 0x406   : > { %1477 = shalt.err (!%p1474_p13)
}
 0x407   : > { %s1478_s27 = scalar_lea.hbm %s2201_s24, 128  ;;  %s1482_s28 = scalar_lea.hbm %s2411_s16, 1024 }
 0x408   : > { %p1479_p1 = scmp.ne.s32.totalorder %s2201_s24, %s1478_s27  ;;  %p1483_p8 = scmp.lt.u32.totalorder %s2201_s24, %s2411_s16 }
 0x409   : > { %p1484_p4 = scmp.lt.u32.totalorder %s1482_s28, %s1478_s27  ;;  %p1486_p12 = scmp.lt.u32.totalorder %s1478_s27, %s2201_s24 }
 0x40a   : > { %p1480_p0 = pnand %p1479_p1, %p2412_p6 }
 0x40b   : > { %p1485_p9 = por %p1484_p4, %p1483_p8 }
 0x40c   : > { %p1481_p2 = pneg %p1480_p0 }
 0x40d   : > { %p1487_p7 = por %p1486_p12, %p1485_p9 }
 0x40f   : > { %p1488_p5 = pnand %p1487_p7, %p1481_p2 }
 0x411   : > { %1491 = shalt.err (!%p1488_p5)
}
 0x412   : > { %1129 = dma.vmem_to_hbm [thread:$0]  (%p2412_p6), %s806_s25, 128, %s2201_s24, %s773_s29  }
 0x413   : > { %s507_s17 = scalar_lea.vmem [#allocation13], %s1056_s5  ;;  %s2413_s3 = sld [smem:[#allocation38_spill]] }
 0x414   : > { %s789_s30 = sshll.u32 %s507_s17, 4  ;;  %s768_s24 = scalar_lea.sflag [#allocation4], %s2160_s10  ;;  %s2230_s30 = int_to_ptr.vmem [resolvable:$true] %s789_s30 }
 0x415   : > { %s1492_s25 = scalar_lea.vmem %s2230_s30, 128  ;;  %s1667_s5 = smov [#allocation13]  }
 0x416   : > { %p1493_p3 = scmp.ne.s32.totalorder %s2230_s30, %s1492_s25  ;;  %s1496_s15 = sshll.u32 %s1667_s5, 4  ;;  %s1497_s15 = int_to_ptr.vmem [resolvable:$false] %s1496_s15 }
 0x417   : > { %p1499_p13 = scmp.lt.s32.totalorder %s2230_s30, %s1497_s15 }
 0x418   : > { %p1494_p11 = pnand %p1493_p3, %p2412_p6 }
 0x419   : > { %s2228_s28 = scalar_lea.hbm %s2413_s3, %s1071_s22  ;;  %s1498_s22 = scalar_lea.vmem %s1497_s15, 256 }
 0x41a   : > { %p1495_p10 = pneg %p1494_p11  ;;  %p1500_p1 = scmp.lt.s32.totalorder %s1498_s22, %s1492_s25 }
 0x41c   : > { %p1501_p0 = por %p1500_p1, %p1499_p13 }
 0x41e   : > { %p1502_p2 = pnand %p1501_p0, %p1495_p10 }
 0x4d8   : > { %v760_v39 = vpop.f32.mrb[4].mxu1 }
 0x4d9   : > { %766 = vst.msk [vmem:[%s507_s17] sm:$0xff] %vm658_vm2, %v760_v39  ;;  %v1114_v40 = vpop.f32.mrb[5].mxu1 }
 0x4da   : > { %v763_v41 = vpop.f32.mrb[6].mxu1 }
 0x4db   : > { %1505 = shalt.err (!%p1502_p2)
}
 0x4dc   : > { %s1506_s10 = scalar_lea.hbm %s2228_s28, 128  ;;  %s1510_s7 = scalar_lea.hbm %s2413_s3, 1024 }
 0x4dd   : > { %p1507_p8 = scmp.ne.s32.totalorder %s2228_s28, %s1506_s10  ;;  %p1511_p12 = scmp.lt.u32.totalorder %s2228_s28, %s2413_s3 }
 0x4de   : > { %p1512_p7 = scmp.lt.u32.totalorder %s1510_s7, %s1506_s10  ;;  %p1514_p3 = scmp.lt.u32.totalorder %s1506_s10, %s2228_s28 }
 0x4df   : > { %p1508_p4 = pnand %p1507_p8, %p2412_p6 }
 0x4e0   : > { %p1513_p5 = por %p1512_p7, %p1511_p12 }
 0x4e1   : > { %p1509_p9 = pneg %p1508_p4 }
 0x4e2   : > { %p1515_p11 = por %p1514_p3, %p1513_p5 }
 0x4e4   : > { %p1516_p10 = pnand %p1515_p11, %p1509_p9 }
 0x4e6   : > { %1519 = shalt.err (!%p1516_p10)
}
 0x4e7   : > { %1128 = dma.vmem_to_hbm [thread:$0]  (%p2412_p6), %s2230_s30, 128, %s2228_s28, %s768_s24   ;;  %v1115_v42 = vpop.f32.mrb[7].mxu1 }
 0x4e8 PF: > { %s2414_s20 = sld [smem:[#allocation22_spill]]  ;;  %p1159_p13 = scmp.ge.s32.totalorder %s1654_s14, 2 }
 0x4e9   : > { %p2415_p1 = scmp.ne.s32.totalorder %s2396_s6, 0 }
 0x4eb   : > { %p1152_p0 = pnand %p1159_p13, %p2415_p1 }
 0x4ee   : > { %s817_s23 = sand.u32 1, %s2414_s20  }
 0x4ef   : > { %s818_s25 = scalar_lea.sflag [#allocation4], %s817_s23 }
 0x4f0   : > { %1593 = dma.done.wait (!%p1152_p0), %s818_s25, 128  }
 0x4f1   : > { %1595 = vsyncadd (!%p1152_p0), %s818_s25, 4294967168  ;;  %s827_s5 = scalar_lea.sflag [#allocation15], %s817_s23 }
 0x4f2   : > { %1597 = dma.done.wait (!%p1152_p0), %s827_s5, 128  }
 0x4f3   : > { %1599 = vsyncadd (!%p1152_p0), %s827_s5, 4294967168  ;;  %s36_s14 = sadd.s32 1, %s1654_s14   ;;  %s2417_s24 = sld [smem:[#allocation23_spill]] }
 0x4f4   : > { %p2260_p2 = scmp.ge.s32.totalorder %s36_s14, 10   ;;  %s2418_s25 = sld [smem:[#allocation24_spill]] }
 0x4f5   : > { %s2419_s27 = sld [smem:[#allocation25_spill]]  ;;  %s2420_s28 = sld [smem:[#allocation26_spill]] }
 0x4f6   : > { %s2421_s6 = sld [smem:[#allocation34_spill]]  ;;  %s2422_s15 = smov %s2439_s26 }
 0x4f7   : > { %s2423_s22 = sld [smem:[#allocation31_spill]]  ;;  %s2425_s26 = smov %s2072_s18 }
 0x4f8   : > { %s2426_s29 = smov %s2441_s1  ;;  %s2427_s30 = smov %s1630_s8 }
 0x4f9   : > { %s2428_s8 = smov %s1634_s9  ;;  %s2430_s10 = smov %s1646_s12 }
 0x4fa   : > { %s2431_s11 = smov %s1650_s13  ;;  %s2432_s12 = smov %s2422_s15 }
 0x4fb   :  { %35 = sbr.rel (!%p2260_p2) target bundleno = 24 (0x18), region = 168 }
 0x4fc   : > { %s2429_s9 = smov %s2421_s6 }
 0x4fd   : > { %s2433_s13 = smov %s2423_s22 }
 0x502   :  { %832 = vsyncpa [#allocation3], 1 }
 0x503   :  { %834 = vsyncpa [#allocation3 + $0x1], 1 }
 0x504   :  { %835 = vsyncpa [#allocation6], 1 }
 0x505   :  { %837 = vsyncpa [#allocation6 + $0x1], 1 }
 0x506   :  { %838 = vsyncpa [#allocation9], 1 }
 0x507   :  { %840 = vsyncpa [#allocation9 + $0x1], 1 }
 0x508   :  { %841 = vsyncpa [#allocation12], 1 }
 0x509   :  { %843 = vsyncpa [#allocation12 + $0x1], 1 }
 0x50a   :  { %844 = vsyncpa [#allocation4], 1 }
 0x50b   :  { %846 = vsyncpa [#allocation4 + $0x1], 1 }
 0x50c   :  { %847 = vsyncpa [#allocation15], 1 }
 0x50d   :  { %849 = vsyncpa [#allocation15 + $0x1], 1 }

</bundles_post_ra>
